<compile_context>
chip_gen: v7x
topology: tpu7x:2x2x1
jax: 0.10.0
libtpu: 0.0.40
codegen_flags: <defaults>
</compile_context>

<pallas_src>
import jax
import jax.numpy as jnp
from jax import lax
from jax.experimental import pallas as pl
from jax.experimental.pallas import tpu as pltpu


def _round_up(x, m):
    return (x + m - 1) // m * m


def _lstur_gru_kernel(max_len_ref,            # SMEM [nb] int32 (scalar prefetch)
                      hist_ref,               # [1, L*TB, Dp] bf16, time-major rows (t*TB + b)
                      len_ref,                # [TB, 1] int32 valid history lengths
                      user_ref,               # [TB, Dp] long-term user embedding == h0
                      w_ih_ref, w_hh_ref,     # [Dp, 3*Dp] bf16, gates (r|z|n) lane-padded
                      b_ih_ref, b_hh_ref,     # [1, 3*Dp] f32
                      out_ref,                # [TB, Dp] final hidden state
                      gx_ref):                # VMEM scratch [L*TB, 3*Dp] f32
    TB, Dp = out_ref.shape

    w_ih = w_ih_ref[...]
    w_hh = w_hh_ref[...]
    b_ih = b_ih_ref[...]
    b_hh = b_hh_ref[...]

    # Non-recurrent input projections for every timestep and all three gates
    # in a single MXU matmul (M = L*TB, N = 3*Dp).  Rows are time-major.
    hist2 = hist_ref[0]                                            # [L*TB, Dp] bf16
    gx_ref[...] = jnp.dot(hist2, w_ih,
                          preferred_element_type=jnp.float32) + b_ih

    lens = len_ref[...]                                            # [TB, 1] int32
    h0 = user_ref[...].astype(jnp.float32)                         # [TB, Dp]
    t_max = max_len_ref[pl.program_id(0)]                          # per-tile max length

    def step(t, h):
        row = pl.multiple_of(t * TB, TB)
        gx = gx_ref[pl.ds(row, TB), :]                             # [TB, 3*Dp]
        # One recurrent matmul per step for all three gates (bf16 in, f32 acc).
        gh = jnp.dot(h.astype(w_hh.dtype), w_hh,
                     preferred_element_type=jnp.float32) + b_hh

        # Each gate occupies a lane-aligned Dp-wide block (Dp % 128 == 0).
        r = jax.nn.sigmoid(gx[:, :Dp] + gh[:, :Dp])
        z = jax.nn.sigmoid(gx[:, Dp:2 * Dp] + gh[:, Dp:2 * Dp])
        n = jnp.tanh(gx[:, 2 * Dp:] + r * gh[:, 2 * Dp:])
        h_new = (1.0 - z) * n + z * h

        # Users whose history is shorter than t keep their previous hidden
        # state (== pack_padded_sequence + GRU final-hidden semantics);
        # zero-length users keep h == user_embedding.
        m = (lens > t).astype(jnp.float32)                         # [TB, 1]
        return m * h_new + (1.0 - m) * h

    # Serial recurrence bounded by the per-tile max history length.  The trip
    # count is dynamic (SMEM scalar), so no unroll is requested here.
    h_final = lax.fori_loop(0, t_max, step, h0)
    out_ref[...] = h_final.astype(out_ref.dtype)


def lstur_user_encoder(history_embedding, user_history_mask, user_embedding,
                       candidate_news_representation, w_ih, w_hh, b_ih, b_hh):
    """LSTUR.forward given the news_encoder output.

    history_embedding:             [B, L, D]
    user_history_mask:             [B, L]   (0/1 floats)
    user_embedding:                [B, D]
    candidate_news_representation: [B, news_num, D] (only news_num is used)
    w_ih, w_hh:                    [3, D, D]  gate order (r, z, n), applied as x @ w
    b_ih, b_hh:                    [3, 1, D]
    returns:                       [B, news_num, D]
    """
    B, L, D = history_embedding.shape
    news_num = candidate_news_representation.shape[1]
    out_dtype = history_embedding.dtype
    mxu_dtype = jnp.bfloat16

    Dp = _round_up(D, 128)            # one lane-aligned block per gate
    G = 3 * Dp

    # ---- batch tile from the device VMEM budget (generation-aware) --------
    try:
        vmem_cap = int(pltpu.get_tpu_info().vmem_capacity_bytes)
    except Exception:
        vmem_cap = 64 * 1024 * 1024   # conservative fallback (v7x per-TC)
    vmem_limit = int(min(vmem_cap * 0.85, 112 * 1024 * 1024))
    budget = int(vmem_limit * 0.85)

    fixed_bytes = 2 * Dp * G * 2 + 2 * G * 4            # packed weights + biases
    per_row = (2 * L * Dp * 2                            # hist slab, double-buffered, bf16
               + L * G * 4                               # gate scratch, f32
               + 8 * Dp * 4)                             # h / gates / output slack
    tb_fit = max(8, ((budget - fixed_bytes) // per_row) // 8 * 8)
    TB = int(min(128, tb_fit))

    Bp8 = _round_up(B, 8)
    TB = min(TB, Bp8)                                    # never below 8, never above batch
    if Bp8 >= 16 and TB >= Bp8:                          # keep >=2 grid tiles (2 TCs)
        TB = max(8, _round_up((Bp8 + 1) // 2, 8))
    Bp = _round_up(B, TB)
    nb = Bp // TB

    # user_history_num = user_history_mask.sum(dim=1) in the PyTorch module.
    lengths = jnp.sum(user_history_mask, axis=1).astype(jnp.int32)          # [B]
    lengths_p = jnp.pad(lengths, (0, Bp - B)).reshape(Bp, 1)                 # [Bp, 1]
    tile_max = jnp.max(lengths_p.reshape(nb, TB), axis=1).astype(jnp.int32)  # [nb]

    # History: pad to (Bp, L, Dp), cast to bf16, and lay each batch tile out
    # as one contiguous time-major [L*TB, Dp] slab (row index = t*TB + b).
    hist = jnp.pad(history_embedding.astype(mxu_dtype),
                   ((0, Bp - B), (0, 0), (0, Dp - D)))                       # [Bp, L, Dp]
    hist = hist.reshape(nb, TB, L, Dp).transpose(0, 2, 1, 3)                 # [nb, L, TB, Dp]
    hist = hist.reshape(nb, L * TB, Dp)

    user_p = jnp.pad(user_embedding, ((0, Bp - B), (0, Dp - D)))             # [Bp, Dp]

    # Pack the 3 gates of W_ih / W_hh into single [Dp, 3*Dp] bf16 matrices,
    # each gate zero-padded to its own 128-lane-aligned block.  Zero padding
    # keeps the padded lanes of h at exactly 0 for all timesteps.
    def pack_w(w):
        wp = jnp.zeros((Dp, G), dtype=mxu_dtype)
        for g in range(3):
            wp = wp.at[:D, g * Dp:g * Dp + D].set(w[g].astype(mxu_dtype))
        return wp

    def pack_b(b):
        bp = jnp.zeros((1, G), dtype=jnp.float32)
        for g in range(3):
            bp = bp.at[0, g * Dp:g * Dp + D].set(b[g, 0].astype(jnp.float32))
        return bp

    w_ih_p, w_hh_p = pack_w(w_ih), pack_w(w_hh)
    b_ih_p, b_hh_p = pack_b(b_ih), pack_b(b_hh)

    flops = int(4 * Bp * L * Dp * G)             # input projection + recurrent matmuls
    transcendentals = int(3 * Bp * L * Dp)
    bytes_accessed = int(2 * Bp * L * Dp + 2 * 4 * Bp * Dp + 2 * 2 * Dp * G
                         + 2 * 4 * G + 4 * Bp)

    user_rep = pl.pallas_call(
        _lstur_gru_kernel,
        out_shape=jax.ShapeDtypeStruct((Bp, Dp), out_dtype),
        grid_spec=pltpu.PrefetchScalarGridSpec(
            num_scalar_prefetch=1,
            grid=(nb,),
            in_specs=[
                pl.BlockSpec((1, L * TB, Dp), lambda i, ml: (i, 0, 0)),   # history slab
                pl.BlockSpec((TB, 1), lambda i, ml: (i, 0)),              # lengths
                pl.BlockSpec((TB, Dp), lambda i, ml: (i, 0)),             # user embedding
                pl.BlockSpec((Dp, G), lambda i, ml: (0, 0)),              # W_ih (VMEM resident)
                pl.BlockSpec((Dp, G), lambda i, ml: (0, 0)),              # W_hh (VMEM resident)
                pl.BlockSpec((1, G), lambda i, ml: (0, 0)),               # b_ih
                pl.BlockSpec((1, G), lambda i, ml: (0, 0)),               # b_hh
            ],
            out_specs=pl.BlockSpec((TB, Dp), lambda i, ml: (i, 0)),
            scratch_shapes=[pltpu.VMEM((L * TB, G), jnp.float32)],        # packed gate scratch
        ),
        compiler_params=pltpu.CompilerParams(
            dimension_semantics=("parallel",),    # batch tiles split across TensorCores
            vmem_limit_bytes=vmem_limit,
        ),
        cost_estimate=pl.CostEstimate(
            flops=flops,
            transcendentals=transcendentals,
            bytes_accessed=bytes_accessed,
        ),
    )(tile_max, hist, lengths_p, user_p, w_ih_p, w_hh_p, b_ih_p, b_hh_p)

    user_rep = user_rep[:B, :D]
    # unsqueeze(1).expand(-1, news_num, -1): pure broadcasting glue in JAX.
    return jnp.broadcast_to(user_rep[:, None, :], (B, news_num, D))


def _reference(history, mask, user_emb, cand, w_ih, w_hh, b_ih, b_hh):
    """Pure-JAX reference (length-masked GRU == packed-GRU final hidden),
    with matmul operands rounded to bf16 like the kernel (f32 accumulation)."""
    B, L, D = history.shape
    news_num = cand.shape[1]
    lengths = jnp.sum(mask, axis=1).astype(jnp.int32)

    def rnd(a):
        return a.astype(jnp.bfloat16).astype(jnp.float32)

    h = user_emb.astype(jnp.float32)
    for t in range(L):
        x = rnd(history[:, t, :])
        r = jax.nn.sigmoid(x @ rnd(w_ih[0]) + b_ih[0] + rnd(h) @ rnd(w_hh[0]) + b_hh[0])
        z = jax.nn.sigmoid(x @ rnd(w_ih[1]) + b_ih[1] + rnd(h) @ rnd(w_hh[1]) + b_hh[1])
        n = jnp.tanh(x @ rnd(w_ih[2]) + b_ih[2] + r * (rnd(h) @ rnd(w_hh[2]) + b_hh[2]))
        h_new = (1.0 - z) * n + z * h
        valid = (lengths > t)[:, None].astype(jnp.float32)
        h = valid * h_new + (1.0 - valid) * h
    return jnp.broadcast_to(h[:, None, :], (B, news_num, D)).astype(history.dtype)


if __name__ == "__main__":
    # Small shapes consistent with the module:
    #   batch B=2, history length L=8, news_embedding_dim D=32, news_num=4.
    B, L, D, NEWS_NUM = 2, 8, 32, 4

    key = jax.random.PRNGKey(0)
    k_h, k_c, k_u, k_wi, k_wh, k_bi, k_bh = jax.random.split(key, 7)

    history_embedding = jax.random.normal(k_h, (B, L, D), dtype=jnp.float32)
    candidate_news_representation = jax.random.normal(
        k_c, (B, NEWS_NUM, D), dtype=jnp.float32)
    user_embedding = jax.random.normal(k_u, (B, D), dtype=jnp.float32)

    # First user has 5 valid history items, second has 0 -- exercises both the
    # GRU path and the "empty history -> user_embedding" fallback of LSTUR.
    lens = jnp.array([5, 0], dtype=jnp.int32)
    user_history_mask = (jnp.arange(L)[None, :] < lens[:, None]).astype(jnp.float32)

    scale = 1.0 / (D ** 0.5)
    w_ih = jax.random.uniform(k_wi, (3, D, D), minval=-scale, maxval=scale,
                              dtype=jnp.float32)
    w_hh = jax.random.uniform(k_wh, (3, D, D), minval=-scale, maxval=scale,
                              dtype=jnp.float32)
    b_ih = jax.random.uniform(k_bi, (3, 1, D), minval=-scale, maxval=scale,
                              dtype=jnp.float32)
    b_hh = jax.random.uniform(k_bh, (3, 1, D), minval=-scale, maxval=scale,
                              dtype=jnp.float32)

    out = lstur_user_encoder(history_embedding, user_history_mask, user_embedding,
                             candidate_news_representation, w_ih, w_hh, b_ih, b_hh)
    out = jax.block_until_ready(out)

    ref = _reference(history_embedding, user_history_mask, user_embedding,
                     candidate_news_representation, w_ih, w_hh, b_ih, b_hh)

    assert out.shape == (B, NEWS_NUM, D)
    # bf16 MXU operands => compare against the bf16-rounded reference.
    assert jnp.allclose(out, ref, atol=5e-3, rtol=5e-3), "mismatch vs reference"
    # Zero-history user must fall back to its long-term user embedding (exact).
    assert jnp.allclose(out[1, 0], user_embedding[1], atol=1e-5, rtol=1e-5)

    print("KERNEL_OK")
</pallas_src>

<mosaic_0001>
module attributes {stable_mosaic.version = 11 : i64} {
  func.func @_lstur_gru_kernel(%arg0: i32, %arg1: memref<1xi32, #tpu.memory_space<smem>>, %arg2: memref<1x64x128xbf16, #tpu.memory_space<vmem>>, %arg3: memref<8x1xi32, #tpu.memory_space<vmem>>, %arg4: memref<8x128xf32, #tpu.memory_space<vmem>>, %arg5: memref<128x384xbf16, #tpu.memory_space<vmem>>, %arg6: memref<128x384xbf16, #tpu.memory_space<vmem>>, %arg7: memref<1x384xf32, #tpu.memory_space<vmem>>, %arg8: memref<1x384xf32, #tpu.memory_space<vmem>>, %arg9: memref<8x128xf32, #tpu.memory_space<vmem>>, %arg10: memref<64x384xf32, #tpu.memory_space<vmem>>) attributes {dimension_semantics = [#tpu.dimension_semantics<parallel>], iteration_bounds = array<i64: 1>, scalar_prefetch = 1 : i64, scratch_operands = 1 : i64, tpu.core_type = #tpu.core_type<tc>, window_params = [{transform_indices = @transform_0, window_bounds = array<i64: 1, 64, 128>}, {transform_indices = @transform_1, window_bounds = array<i64: 8, 1>}, {transform_indices = @transform_2, window_bounds = array<i64: 8, 128>}, {pipeline_mode = #tpu.pipeline_mode<synchronous>, transform_indices = @transform_3, window_bounds = array<i64: 128, 384>}, {pipeline_mode = #tpu.pipeline_mode<synchronous>, transform_indices = @transform_4, window_bounds = array<i64: 128, 384>}, {pipeline_mode = #tpu.pipeline_mode<synchronous>, transform_indices = @transform_5, window_bounds = array<i64: 1, 384>}, {pipeline_mode = #tpu.pipeline_mode<synchronous>, transform_indices = @transform_6, window_bounds = array<i64: 1, 384>}, {transform_indices = @transform_7, window_bounds = array<i64: 8, 128>}]} {
    %c0 = arith.constant 0 : index
    %c0_0 = arith.constant 0 : index
    %0 = vector.load %arg5[%c0, %c0_0] : memref<128x384xbf16, #tpu.memory_space<vmem>>, vector<128x384xbf16>
    %c0_1 = arith.constant 0 : index
    %c0_2 = arith.constant 0 : index
    %1 = vector.load %arg6[%c0_1, %c0_2] : memref<128x384xbf16, #tpu.memory_space<vmem>>, vector<128x384xbf16>
    %c0_3 = arith.constant 0 : index
    %c0_4 = arith.constant 0 : index
    %2 = vector.load %arg7[%c0_3, %c0_4] : memref<1x384xf32, #tpu.memory_space<vmem>>, vector<1x384xf32>
    %c0_5 = arith.constant 0 : index
    %c0_6 = arith.constant 0 : index
    %3 = vector.load %arg8[%c0_5, %c0_6] : memref<1x384xf32, #tpu.memory_space<vmem>>, vector<1x384xf32>
    %c0_7 = arith.constant 0 : index
    %c0_8 = arith.constant 0 : index
    %c0_9 = arith.constant 0 : index
    %4 = vector.load %arg2[%c0_7, %c0_8, %c0_9] : memref<1x64x128xbf16, #tpu.memory_space<vmem>>, vector<1x64x128xbf16>
    %5 = vector.shape_cast %4 : vector<1x64x128xbf16> to vector<64x128xbf16>
    %cst = arith.constant dense<0.000000e+00> : vector<64x384xf32>
    %6 = tpu.matmul %5, %0, %cst {dimension_numbers = #tpu.dot_dimension_numbers<[1], [0], [0], [1], [0, 0, 1, 1], [], []>} : vector<64x128xbf16>, vector<128x384xbf16>, vector<64x384xf32> -> vector<64x384xf32>
    %7 = vector.broadcast %2 : vector<1x384xf32> to vector<64x384xf32>
    %8 = arith.addf %6, %7 : vector<64x384xf32>
    %c0_10 = arith.constant 0 : index
    %c0_11 = arith.constant 0 : index
    %9 = vector.load %arg10[%c0_10, %c0_11] : memref<64x384xf32, #tpu.memory_space<vmem>>, vector<64x384xf32>
    tpu.vector_store %arg10[%c0_10, %c0_11], %8 {strides = array<i32>} : memref<64x384xf32, #tpu.memory_space<vmem>>, vector<64x384xf32>,
    %c0_12 = arith.constant 0 : index
    %c0_13 = arith.constant 0 : index
    %10 = vector.load %arg3[%c0_12, %c0_13] : memref<8x1xi32, #tpu.memory_space<vmem>>, vector<8x1xi32>
    %c0_14 = arith.constant 0 : index
    %c0_15 = arith.constant 0 : index
    %11 = vector.load %arg4[%c0_14, %c0_15] : memref<8x128xf32, #tpu.memory_space<vmem>>, vector<8x128xf32>
    %12 = arith.index_cast %arg0 : i32 to index
    %13 = memref.load %arg1[%12] : memref<1xi32, #tpu.memory_space<smem>>
    %c0_i32 = arith.constant 0 : i32
    %14 = arith.subi %13, %c0_i32 : i32
    %15 = arith.addi %c0_i32, %14 : i32
    %c1_i32 = arith.constant 1 : i32
    %16 = scf.for %arg11 = %c0_i32 to %15 step %c1_i32 iter_args(%arg12 = %11) -> (vector<8x128xf32>)  : i32 {
      %c8_i32 = arith.constant 8 : i32
      %18 = arith.muli %arg11, %c8_i32 : i32
      %19 = tpu.assume_multiple %18, 8 : i32
      %20 = arith.index_cast %19 : i32 to index
      %c0_18 = arith.constant 0 : index
      %21 = vector.load %arg10[%20, %c0_18] : memref<64x384xf32, #tpu.memory_space<vmem>>, vector<8x384xf32>
      %22 = arith.truncf %arg12 : vector<8x128xf32> to vector<8x128xbf16>
      %cst_19 = arith.constant dense<0.000000e+00> : vector<8x384xf32>
      %23 = tpu.matmul %22, %1, %cst_19 {dimension_numbers = #tpu.dot_dimension_numbers<[1], [0], [0], [1], [0, 0, 1, 1], [], []>} : vector<8x128xbf16>, vector<128x384xbf16>, vector<8x384xf32> -> vector<8x384xf32>
      %24 = vector.broadcast %3 : vector<1x384xf32> to vector<8x384xf32>
      %25 = arith.addf %23, %24 : vector<8x384xf32>
      %26 = vector.extract_strided_slice %21 {offsets = [0, 0], sizes = [8, 128], strides = [1, 1]} : vector<8x384xf32> to vector<8x128xf32>
      %27 = vector.extract_strided_slice %25 {offsets = [0, 0], sizes = [8, 128], strides = [1, 1]} : vector<8x384xf32> to vector<8x128xf32>
      %28 = arith.addf %26, %27 : vector<8x128xf32>
      %29 = arith.negf %28 : vector<8x128xf32>
      %30 = math.exp %29 : vector<8x128xf32>
      %cst_20 = arith.constant 1.000000e+00 : f32
      %31 = vector.broadcast %cst_20 : f32 to vector<8x128xf32>
      %32 = arith.addf %31, %30 : vector<8x128xf32>
      %33 = arith.divf %31, %32 : vector<8x128xf32>
      %34 = vector.extract_strided_slice %21 {offsets = [0, 128], sizes = [8, 128], strides = [1, 1]} : vector<8x384xf32> to vector<8x128xf32>
      %35 = vector.extract_strided_slice %25 {offsets = [0, 128], sizes = [8, 128], strides = [1, 1]} : vector<8x384xf32> to vector<8x128xf32>
      %36 = arith.addf %34, %35 : vector<8x128xf32>
      %37 = arith.negf %36 : vector<8x128xf32>
      %38 = math.exp %37 : vector<8x128xf32>
      %cst_21 = arith.constant 1.000000e+00 : f32
      %39 = vector.broadcast %cst_21 : f32 to vector<8x128xf32>
      %40 = arith.addf %39, %38 : vector<8x128xf32>
      %41 = arith.divf %39, %40 : vector<8x128xf32>
      %42 = vector.extract_strided_slice %21 {offsets = [0, 256], sizes = [8, 128], strides = [1, 1]} : vector<8x384xf32> to vector<8x128xf32>
      %43 = vector.extract_strided_slice %25 {offsets = [0, 256], sizes = [8, 128], strides = [1, 1]} : vector<8x384xf32> to vector<8x128xf32>
      %44 = arith.mulf %33, %43 : vector<8x128xf32>
      %45 = arith.addf %42, %44 : vector<8x128xf32>
      %46 = math.tanh %45 : vector<8x128xf32>
      %cst_22 = arith.constant 1.000000e+00 : f32
      %47 = vector.broadcast %cst_22 : f32 to vector<8x128xf32>
      %48 = arith.subf %47, %41 : vector<8x128xf32>
      %49 = arith.mulf %48, %46 : vector<8x128xf32>
      %50 = arith.mulf %41, %arg12 : vector<8x128xf32>
      %51 = arith.addf %49, %50 : vector<8x128xf32>
      %52 = vector.broadcast %arg11 : i32 to vector<8x1xi32>
      %53 = arith.cmpi sgt, %10, %52 : vector<8x1xi32>
      %54 = arith.extui %53 : vector<8x1xi1> to vector<8x1xi32>
      %55 = arith.sitofp %54 : vector<8x1xi32> to vector<8x1xf32>
      %56 = vector.broadcast %55 : vector<8x1xf32> to vector<8x128xf32>
      %57 = arith.mulf %56, %51 : vector<8x128xf32>
      %cst_23 = arith.constant 1.000000e+00 : f32
      %58 = vector.broadcast %cst_23 : f32 to vector<8x1xf32>
      %59 = arith.subf %58, %55 : vector<8x1xf32>
      %60 = vector.broadcast %59 : vector<8x1xf32> to vector<8x128xf32>
      %61 = arith.mulf %60, %arg12 : vector<8x128xf32>
      %62 = arith.addf %57, %61 : vector<8x128xf32>
      scf.yield %62 : vector<8x128xf32>
    }
    %c0_16 = arith.constant 0 : index
    %c0_17 = arith.constant 0 : index
    %17 = vector.load %arg9[%c0_16, %c0_17] : memref<8x128xf32, #tpu.memory_space<vmem>>, vector<8x128xf32>
    tpu.vector_store %arg9[%c0_16, %c0_17], %16 {strides = array<i32>} : memref<8x128xf32, #tpu.memory_space<vmem>>, vector<8x128xf32>,
    return
  }
  func.func @transform_0(%arg0: i32, %arg1: memref<1xi32, #tpu.memory_space<smem>>) -> (i32, i32, i32) {
    %c0_i32 = arith.constant 0 : i32
    %c0_i32_0 = arith.constant 0 : i32
    %c0_i32_1 = arith.constant 0 : i32
    return %arg0, %c0_i32, %c0_i32_0 : i32, i32, i32
  }
  func.func @transform_1(%arg0: i32, %arg1: memref<1xi32, #tpu.memory_space<smem>>) -> (i32, i32) {
    %c0_i32 = arith.constant 0 : i32
    %c0_i32_0 = arith.constant 0 : i32
    return %arg0, %c0_i32 : i32, i32
  }
  func.func @transform_2(%arg0: i32, %arg1: memref<1xi32, #tpu.memory_space<smem>>) -> (i32, i32) {
    %c0_i32 = arith.constant 0 : i32
    %c0_i32_0 = arith.constant 0 : i32
    return %arg0, %c0_i32 : i32, i32
  }
  func.func @transform_3(%arg0: i32, %arg1: memref<1xi32, #tpu.memory_space<smem>>) -> (i32, i32) {
    %c0_i32 = arith.constant 0 : i32
    %c0_i32_0 = arith.constant 0 : i32
    %c0_i32_1 = arith.constant 0 : i32
    return %c0_i32, %c0_i32_0 : i32, i32
  }
  func.func @transform_4(%arg0: i32, %arg1: memref<1xi32, #tpu.memory_space<smem>>) -> (i32, i32) {
    %c0_i32 = arith.constant 0 : i32
    %c0_i32_0 = arith.constant 0 : i32
    %c0_i32_1 = arith.constant 0 : i32
    return %c0_i32, %c0_i32_0 : i32, i32
  }
  func.func @transform_5(%arg0: i32, %arg1: memref<1xi32, #tpu.memory_space<smem>>) -> (i32, i32) {
    %c0_i32 = arith.constant 0 : i32
    %c0_i32_0 = arith.constant 0 : i32
    %c0_i32_1 = arith.constant 0 : i32
    return %c0_i32, %c0_i32_0 : i32, i32
  }
  func.func @transform_6(%arg0: i32, %arg1: memref<1xi32, #tpu.memory_space<smem>>) -> (i32, i32) {
    %c0_i32 = arith.constant 0 : i32
    %c0_i32_0 = arith.constant 0 : i32
    %c0_i32_1 = arith.constant 0 : i32
    return %c0_i32, %c0_i32_0 : i32, i32
  }
  func.func @transform_7(%arg0: i32, %arg1: memref<1xi32, #tpu.memory_space<smem>>) -> (i32, i32) {
    %c0_i32 = arith.constant 0 : i32
    %c0_i32_0 = arith.constant 0 : i32
    return %arg0, %c0_i32 : i32, i32
  }
}

</mosaic_0001>

<bundles_post_ra>
// kernel: tpu_custom_call.1
= control target key start
LH: loop header
LB: loop body
LE: loop exit
PB: predicated region body
PF: predicated region fallthrough
CT: control target
= control target key end

     0   :  { %14 = vsyncpa [#allocation6], 0  ;;  %s1431_s0 = inlined_call_operand.<no memory space> [shape: s32[1], index: 0, kind: input, shape index: {}]   ;;  %s1432_s1 = inlined_call_operand.hbm [shape: bf16[1,64,128], index: 1, kind: input, shape index: {}]   ;;  %s1433_s2 = inlined_call_operand.vmem [shape: s32[8,1], index: 2, kind: input, shape index: {}]   ;;  %s1434_s3 = inlined_call_operand.vmem [shape: f32[8,128], index: 3, kind: input, shape index: {}]   ;;  %s1435_s4 = inlined_call_operand.hbm [shape: bf16[128,384], index: 4, kind: input, shape index: {}]   ;;  %s1436_s5 = inlined_call_operand.hbm [shape: bf16[128,384], index: 5, kind: input, shape index: {}]   ;;  %s1437_s6 = inlined_call_operand.vmem [shape: f32[1,384], index: 6, kind: input, shape index: {}]   ;;  %s1438_s7 = inlined_call_operand.vmem [shape: f32[1,384], index: 7, kind: input, shape index: {}]   ;;  %s1439_s8 = inlined_call_operand.hbm [shape: f32[8,128], index: 8, kind: output, shape index: {}]  }
   0x1   :  { %15 = vsyncpa [#allocation9], 0 }
   0x2   :  { %16 = vsyncpa [#allocation7], 0  ;;  %s1111_s27 = smov [#allocation8]   ;;  %s993_s9 = scalar_lea.hbm %s1435_s4, 3072 }
   0x3   :  { %s38_s28 = sshll.u32 %s1111_s27, 4  ;;  %p994_p0 = scmp.ne.s32.totalorder %s1435_s4, %s993_s9  ;;  %s39_s28 = int_to_ptr.vmem [resolvable:$true] %s38_s28 }
   0x4   :  { %p997_p1 = scmp.lt.u32.totalorder %s993_s9, %s1435_s4 }
   0x6   :  { %p999_p2 = pnand %p997_p1, %p994_p0 }
   0x8   :  { %1002 = shalt.err (!%p999_p2)
}
   0x9   :  { %s1003_s14 = scalar_lea.vmem %s39_s28, 3072  ;;  %p1008_p4 = scmp.lt.s32.totalorder %s39_s28, %s39_s28 }
   0xa   :  { %p1004_p3 = scmp.ne.s32.totalorder %s39_s28, %s1003_s14  ;;  %p1009_p5 = scmp.lt.s32.totalorder %s1003_s14, %s1003_s14 }
   0xc   :  { %p1010_p6 = por %p1009_p5, %p1008_p4 }
   0xe   :  { %p1011_p7 = pnand %p1010_p6, %p1004_p3 }
  0x10   :  { %1014 = shalt.err (!%p1011_p7)
}
  0x11   :  { %s1112_s15 = smov 192   ;;  %s1113_s16 = smov 12  }
  0x12   :  { %44 = dma.hbm_to_vmem [thread:$0]  %s1435_s4, 3072, %s39_s28, [#allocation9], %s1112_s15, %s1112_s15, %s1113_s16  }
  0x13   :  { %s1114_s19 = smov [#allocation5]   ;;  %s1015_s23 = scalar_lea.hbm %s1432_s1, 512 }
  0x14   :  { %s22_s20 = sshll.u32 %s1114_s19, 4  ;;  %p1016_p8 = scmp.ne.s32.totalorder %s1432_s1, %s1015_s23  ;;  %s23_s20 = int_to_ptr.vmem [resolvable:$true] %s22_s20 }
  0x15   :  { %p1019_p9 = scmp.lt.u32.totalorder %s1015_s23, %s1432_s1 }
  0x17   :  { %p1021_p10 = pnand %p1019_p9, %p1016_p8 }
  0x19   :  { %1024 = shalt.err (!%p1021_p10)
}
  0x1a   :  { %s1025_s29 = scalar_lea.vmem %s23_s20, 512  ;;  %p1030_p12 = scmp.lt.s32.totalorder %s23_s20, %s23_s20 }
  0x1b   :  { %p1026_p11 = scmp.ne.s32.totalorder %s23_s20, %s1025_s29  ;;  %p1031_p13 = scmp.lt.s32.totalorder %s1025_s29, %s1025_s29 }
  0x1d   :  { %p1032_p0 = por %p1031_p13, %p1030_p12 }
  0x1f   :  { %p1033_p1 = pnand %p1032_p0, %p1026_p11 }
  0x21   :  { %1036 = shalt.err (!%p1033_p1)
}
  0x22   :  { %s1115_s4 = smov 64   ;;  %s1116_s28 = smov 4  }
  0x23   :  { %28 = dma.hbm_to_vmem [thread:$0]  %s1432_s1, 512, %s23_s20, [#allocation6], %s1115_s4, %s1115_s4, %s1116_s28  }
  0x24   :  { %s1117_s10 = smov [#allocation10]   ;;  %s1037_s14 = scalar_lea.hbm %s1436_s5, 3072 }
  0x25   :  { %s50_s11 = sshll.u32 %s1117_s10, 4  ;;  %p1038_p2 = scmp.ne.s32.totalorder %s1436_s5, %s1037_s14  ;;  %s51_s11 = int_to_ptr.vmem [resolvable:$true] %s50_s11 }
  0x26   :  { %p1041_p3 = scmp.lt.u32.totalorder %s1037_s14, %s1436_s5 }
  0x28   :  { %p1043_p4 = pnand %p1041_p3, %p1038_p2 }
  0x2a   :  { %1046 = shalt.err (!%p1043_p4)
}
  0x2b   :  { %s1047_s22 = scalar_lea.vmem %s51_s11, 3072  ;;  %p1052_p6 = scmp.lt.s32.totalorder %s51_s11, %s51_s11 }
  0x2c   :  { %p1048_p5 = scmp.ne.s32.totalorder %s51_s11, %s1047_s22  ;;  %p1053_p7 = scmp.lt.s32.totalorder %s1047_s22, %s1047_s22 }
  0x2e   :  { %p1054_p8 = por %p1053_p7, %p1052_p6 }
  0x30   :  { %p1055_p9 = pnand %p1054_p8, %p1048_p5 }
  0x32   :  { %1058 = shalt.err (!%p1055_p9)
}
  0x33   :  { %56 = dma.hbm_to_vmem [thread:$0]  %s1436_s5, 3072, %s51_s11, [#allocation9], %s1112_s15, %s1112_s15, %s1113_s16  }
  0x34   :  { %1093 = dma.done.wait [#allocation6], 512  }
  0x35   :  { %1094 = vsyncadd [#allocation6], 4294966784 }
  0x36   :  { %1095 = dma.done.wait [#allocation9], 6144  }
  0x37   :  { %1096 = vsyncadd [#allocation9], 4294961152  ;;  %v1118_v0 = vmov 0   ;;  %v1211_v1 = vld [vmem:[#allocation10] sm:$0xff]  ;;  %v1213_v2 = vld [vmem:[#allocation10 + $0x8] sm:$0xf] }
  0x38   :  { %345 = vmatprep.mubr.bf16.mxu0 %v1118_v0  ;;  %v1215_v3 = vld [vmem:[#allocation10 + $0xc] sm:$0xff]  ;;  %v1217_v4 = vld [vmem:[#allocation10 + $0x14] sm:$0xf]  ;;  %v1219_v5 = vld [vmem:[#allocation10 + $0x18] sm:$0xff]  ;;  %p814_p10 = scmp.le.s32.totalorder %s1431_s0, 0 }
  0x39   :  { %v1221_v6 = vld [vmem:[#allocation10 + $0x20] sm:$0xf]  ;;  %v1223_v7 = vld [vmem:[#allocation10 + $0x24] sm:$0xff]  ;;  %v1225_v8 = vld [vmem:[#allocation10 + $0x2c] sm:$0xf]  ;;  %s1336_s26 = smov (!%p814_p10), 0  }
  0x3a   :  { %v1227_v9 = vld [vmem:[#allocation10 + $0x30] sm:$0xff]  ;;  %v1229_v10 = vld [vmem:[#allocation10 + $0x38] sm:$0xf]  ;;  %v1231_v11 = vld [vmem:[#allocation10 + $0x3c] sm:$0xff] }
  0x3b   :  { %v1233_v12 = vld [vmem:[#allocation10 + $0x44] sm:$0xf]  ;;  %v1235_v13 = vld [vmem:[#allocation10 + $0x48] sm:$0xff]  ;;  %v1237_v14 = vld [vmem:[#allocation10 + $0x50] sm:$0xf] }
  0x3c   :  { %v1239_v15 = vld [vmem:[#allocation10 + $0x54] sm:$0xff]  ;;  %v1241_v16 = vld [vmem:[#allocation10 + $0x5c] sm:$0xf]  ;;  %v1243_v17 = vld [vmem:[#allocation10 + $0x60] sm:$0xff] }
  0x3d   :  { %v1245_v18 = vld [vmem:[#allocation10 + $0x68] sm:$0xf]  ;;  %v1247_v19 = vld [vmem:[#allocation10 + $0x6c] sm:$0xff]  ;;  %v1249_v20 = vld [vmem:[#allocation10 + $0x74] sm:$0xf] }
  0x3e   :  { %v1251_v21 = vld [vmem:[#allocation10 + $0x78] sm:$0xff]  ;;  %v1253_v22 = vld [vmem:[#allocation10 + $0x80] sm:$0xf]  ;;  %v1255_v23 = vld [vmem:[#allocation10 + $0x84] sm:$0xff] }
  0x3f   :  { %v1257_v24 = vld [vmem:[#allocation10 + $0x8c] sm:$0xf]  ;;  %v1259_v25 = vld [vmem:[#allocation10 + $0x90] sm:$0xff]  ;;  %v1261_v26 = vld [vmem:[#allocation10 + $0x98] sm:$0xf] }
  0x40   :  { %v1263_v27 = vld [vmem:[#allocation10 + $0x9c] sm:$0xff]  ;;  %v1265_v28 = vld [vmem:[#allocation10 + $0xa4] sm:$0xf]  ;;  %v1267_v29 = vld [vmem:[#allocation10 + $0xa8] sm:$0xff] }
  0x41   :  { %v1269_v30 = vld [vmem:[#allocation10 + $0xb0] sm:$0xf]  ;;  %v1271_v31 = vld [vmem:[#allocation10 + $0xb4] sm:$0xff]  ;;  %v1273_v32 = vld [vmem:[#allocation10 + $0xbc] sm:$0xf] }
  0x42   :  { %v1278_v33 = vld [vmem:[%s1438_s7] sm:$0x7]  ;;  %v946_v36 = vld [vmem:[#allocation8 + $0x4] ss:$12 sps:$4 sm:$0xff]   ;;  %v949_v38 = vld [vmem:[#allocation8 + $0x1c] ss:$12 sps:$4 sm:$0xff]  }
  0x43   :  { %v1283_v34 = vld [vmem:[%s1433_s2] sm:$0xff]  ;;  %313 = vmatprep.subr.bf16.mxu0 %v946_v36  ;;  %v958_v41 = vld [vmem:[#allocation8 + $0x8] ss:$12 sps:$4 sm:$0xff]   ;;  %v954_v42 = vld [vmem:[#allocation8 + $0x30] ss:$12 sps:$4 sm:$0xff]   ;;  %v146_v36 = vlaneseq }
  0x44   :  { %v1288_v35 = vld [vmem:[%s1434_s3] sm:$0xff]   ;;  %v955_v43 = vld [vmem:[#allocation8 + $0x4c] ss:$12 sps:$4 sm:$0xff]   ;;  %866 = vmatprep.subr.bf16.mxu1 %v958_v41  ;;  %v957_v46 = vld [vmem:[#allocation8 + $0x48] ss:$12 sps:$4 sm:$0xff]  }
  0x45   :  { %v948_v37 = vld [vmem:[#allocation8] ss:$12 sps:$4 sm:$0xff]   ;;  %v951_v39 = vld [vmem:[#allocation8 + $0x18] ss:$12 sps:$4 sm:$0xff]   ;;  %867 = vmatpush3.bf16.msra.mxu1 %v958_v41  ;;  %v970_v48 = vld [vmem:[#allocation8 + $0x50] ss:$12 sps:$4 sm:$0xff]  }
  0x46   :  { %314 = vmatpush1.bf16.msra.mxu0 %v948_v37  ;;  %v952_v40 = vld [vmem:[#allocation8 + $0x34] ss:$12 sps:$4 sm:$0xff]   ;;  %v966_v45 = vld [vmem:[#allocation8 + $0x38] ss:$12 sps:$4 sm:$0xff]   ;;  %v963_v50 = vld [vmem:[#allocation8 + $0x7c] ss:$12 sps:$4 sm:$0xff]  }
  0x47   :  { %315 = vmatprep.subr.bf16.mxu0 %v949_v38  ;;  %v962_v44 = vld [vmem:[#allocation8 + $0x20] ss:$12 sps:$4 sm:$0xff]   ;;  %v959_v47 = vld [vmem:[#allocation8 + $0x64] ss:$12 sps:$4 sm:$0xff]   ;;  %v974_v52 = vld [vmem:[#allocation8 + $0x68] ss:$12 sps:$4 sm:$0xff]  }
  0x48   :  { %868 = vmatprep.subr.bf16.mxu1 %v962_v44  ;;  %v961_v49 = vld [vmem:[#allocation8 + $0x60] ss:$12 sps:$4 sm:$0xff]   ;;  %v965_v53 = vld [vmem:[#allocation8 + $0x78] ss:$12 sps:$4 sm:$0xff]   ;;  %v969_v56 = vld [vmem:[#allocation8 + $0x90] ss:$12 sps:$4 sm:$0xff]  }
  0x49   :  { %869 = vmatpush3.bf16.msra.mxu1 %v962_v44  ;;  %v975_v51 = vld [vmem:[#allocation5] sm:$0xff]   ;;  %v971_v57 = vld [vmem:[#allocation8 + $0xac] ss:$12 sps:$4 sm:$0xff]   ;;  %v973_v59 = vld [vmem:[#allocation8 + $0xa8] ss:$12 sps:$4 sm:$0xff]   ;;  %v1293_v37 = vshrl.u32 %v146_v36, 7 }
  0x4a   :  { %316 = vmatpush1.bf16.msra.mxu0 %v951_v39  ;;  %870 = vmatprep.subr.bf16.mxu1 %v966_v45  ;;  %v967_v54 = vld [vmem:[#allocation8 + $0x94] ss:$12 sps:$4 sm:$0xff]   ;;  %v977_v58 = vld [vmem:[#allocation8 + $0x98] ss:$12 sps:$4 sm:$0xff]   ;;  %v979_v60 = vld [vmem:[#allocation8 + $0xb0] ss:$12 sps:$4 sm:$0xff]  }
  0x4b   :  { %317 = vmatprep.subr.bf16.mxu0 %v952_v40  ;;  %882 = vmatprep.mubr.bf16.mxu1 %v975_v51  ;;  %v976_v55 = vld [vmem:[#allocation8 + $0x80] ss:$12 sps:$4 sm:$0xff]   ;;  %v980_v62 = vld [vmem:[#allocation5 + $0x10] sm:$0xff]   ;;  %v981_v63 = vld [vmem:[#allocation5 + $0x18] sm:$0xff]   ;;  %v148_v38 = vsub.s32 0, %v1293_v37  ;;  %v152_v40 = vsub.s32 1, %v1293_v37 }
  0x4c   :  { %v978_v61 = vld [vmem:[#allocation5 + $0x8] sm:$0xff]   ;;  %v135_v39 = vld [vmem:[%s1437_s6] sm:$0x7] }
  0x4d   :  { %871 = vmatpush3.bf16.msra.mxu1 %v966_v45  ;;  %v1302_v41 = vrot.slane %v135_v39, %v148_v38 }
  0x4e   :  { %318 = vmatpush1.bf16.msra.mxu0 %v954_v42  ;;  %872 = vmatprep.subr.bf16.mxu1 %v970_v48  ;;  %v1306_v42 = vrot.slane %v135_v39, %v152_v40 }
  0x4f   :  { %319 = vmatprep.subr.bf16.mxu0 %v955_v43 }
  0x51   :  { %873 = vmatpush3.bf16.msra.mxu1 %v970_v48 }
  0x52   :  { %320 = vmatpush1.bf16.msra.mxu0 %v957_v46  ;;  %874 = vmatprep.subr.bf16.mxu1 %v974_v52 }
  0x53   :  { %321 = vmatprep.subr.bf16.mxu0 %v959_v47 }
  0x55   :  { %875 = vmatpush3.bf16.msra.mxu1 %v974_v52 }
  0x56   :  { %322 = vmatpush1.bf16.msra.mxu0 %v961_v49  ;;  %876 = vmatprep.subr.bf16.mxu1 %v976_v55 }
  0x57   :  { %323 = vmatprep.subr.bf16.mxu0 %v963_v50 }
  0x59   :  { %877 = vmatpush3.bf16.msra.mxu1 %v976_v55 }
  0x5a   :  { %324 = vmatpush1.bf16.msra.mxu0 %v965_v53  ;;  %878 = vmatprep.subr.bf16.mxu1 %v977_v58 }
  0x5b   :  { %325 = vmatprep.subr.bf16.mxu0 %v967_v54 }
  0x5d   :  { %879 = vmatpush3.bf16.msra.mxu1 %v977_v58 }
  0x5e   :  { %326 = vmatpush1.bf16.msra.mxu0 %v969_v56  ;;  %880 = vmatprep.subr.bf16.mxu1 %v979_v60 }
  0x5f   :  { %327 = vmatprep.subr.bf16.mxu0 %v971_v57 }
  0x61   :  { %881 = vmatpush3.bf16.msra.mxu1 %v979_v60 }
  0x62   :  { %328 = vmatpush1.bf16.msra.mxu0 %v973_v59 }
  0x64   :  { %883 = vmatmul.mubr.bf16.vlgmr.msra.gmra.mrb[0].mxu1 %v978_v61 }
  0x65   :  { %346 = vmatmul.mubr.bf16.vlgmr.msra.gmra.mrb[0].mxu0 %v975_v51  ;;  %886 = vmatprep.mubr.bf16.mxu1 %v980_v62 }
  0x66   :  { %355 = vmatprep.mubr.bf16.mxu0 %v1118_v0 }
  0x6c   :  { %887 = vmatmul.mubr.bf16.gmra.mrb[4].mxu1 %v981_v63 }
  0x6d   :  { %356 = vmatmul.mubr.bf16.gmra.mrb[4].mxu0 %v978_v61 }
  0x6e   :  { %365 = vmatprep.mubr.bf16.mxu0 %v1118_v0 }
  0x75   :  { %366 = vmatmul.mubr.bf16.gmra.mrb[8].mxu0 %v980_v62 }
  0x76   :  { %375 = vmatprep.mubr.bf16.mxu0 %v1118_v0  ;;  %v156_v0 = vsub.s32 2, %v1293_v37 }
  0x78   :  { %v157_v48 = vrot.slane %v135_v39, %v156_v0 }
  0x7d   :  { %376 = vmatmul.mubr.bf16.gmra.mrb[12].mxu0 %v981_v63 }
 0x137   :  { %v884_v52 = vpop.f32.mrb[0].mxu1 }
 0x138   :  { %v347_v43 = vpop.f32.mrb[0].mxu0  ;;  %v429_v53 = vadd.f32 %v884_v52, %v157_v48  ;;  %v420_v54 = vpop.f32.mrb[1].mxu1 }
 0x139   :  { %v348_v44 = vadd.f32 %v347_v43, %v1302_v41  ;;  %v349_v45 = vpop.f32.mrb[1].mxu0  ;;  %v421_v55 = vadd.f32 %v420_v54, %v157_v48  ;;  %v885_v56 = vpop.f32.mrb[2].mxu1 }
 0x13a   :  { %v350_v46 = vadd.f32 %v349_v45, %v1306_v42  ;;  %v351_v47 = vpop.f32.mrb[2].mxu0  ;;  %459 = vst [vmem:[#allocation2 + $0x40] sm:$0xff] %v429_v53  ;;  %v432_v58 = vadd.f32 %v885_v56, %v157_v48  ;;  %v423_v59 = vpop.f32.mrb[3].mxu1 }
 0x13b   :  { %451 = vst [vmem:[#allocation2] sm:$0xff] %v348_v44  ;;  %v352_v49 = vadd.f32 %v351_v47, %v1302_v41  ;;  %v353_v50 = vpop.f32.mrb[3].mxu0  ;;  %453 = vst [vmem:[#allocation2 + $0x10] sm:$0xff] %v421_v55  ;;  %v424_v62 = vadd.f32 %v423_v59, %v157_v48 }
 0x13c   :  { %452 = vst [vmem:[#allocation2 + $0x8] sm:$0xff] %v350_v46  ;;  %v354_v51 = vadd.f32 %v353_v50, %v1306_v42  ;;  %462 = vst [vmem:[#allocation2 + $0x58] sm:$0xff] %v432_v58 }
 0x13d   :  { %454 = vst [vmem:[#allocation2 + $0x18] sm:$0xff] %v352_v49  ;;  %456 = vst [vmem:[#allocation2 + $0x28] sm:$0xff] %v424_v62 }
 0x13e   :  { %455 = vst [vmem:[#allocation2 + $0x20] sm:$0xff] %v354_v51 }
 0x13f   :  { %v888_v45 = vpop.f32.mrb[4].mxu1 }
 0x140   :  { %v357_v57 = vpop.f32.mrb[4].mxu0  ;;  %v445_v46 = vadd.f32 %v888_v45, %v157_v48  ;;  %v436_v47 = vpop.f32.mrb[5].mxu1 }
 0x141   :  { %v358_v60 = vadd.f32 %v357_v57, %v1302_v41  ;;  %v359_v61 = vpop.f32.mrb[5].mxu0  ;;  %v437_v49 = vadd.f32 %v436_v47, %v157_v48  ;;  %v889_v50 = vpop.f32.mrb[6].mxu1 }
 0x142   :  { %v360_v63 = vadd.f32 %v359_v61, %v1306_v42  ;;  %v361_v36 = vpop.f32.mrb[6].mxu0  ;;  %471 = vst [vmem:[#allocation2 + $0xa0] sm:$0xff] %v445_v46  ;;  %v448_v52 = vadd.f32 %v889_v50, %v157_v48  ;;  %v439_v53 = vpop.f32.mrb[7].mxu1  ;;  %v1440_v46 = vmov %v1288_v35 }
 0x143   :  { %457 = vst [vmem:[#allocation2 + $0x30] sm:$0xff] %v358_v60  ;;  %v362_v39 = vadd.f32 %v361_v36, %v1302_v41  ;;  %v363_v43 = vpop.f32.mrb[7].mxu0  ;;  %465 = vst [vmem:[#allocation2 + $0x70] sm:$0xff] %v437_v49  ;;  %v440_v56 = vadd.f32 %v439_v53, %v157_v48 }
 0x144   :  { %458 = vst [vmem:[#allocation2 + $0x38] sm:$0xff] %v360_v63  ;;  %v364_v44 = vadd.f32 %v363_v43, %v1306_v42  ;;  %474 = vst [vmem:[#allocation2 + $0xb8] sm:$0xff] %v448_v52 }
 0x145   :  { %460 = vst [vmem:[#allocation2 + $0x48] sm:$0xff] %v362_v39  ;;  %468 = vst [vmem:[#allocation2 + $0x88] sm:$0xff] %v440_v56 }
 0x146   :  { %461 = vst [vmem:[#allocation2 + $0x50] sm:$0xff] %v364_v44 }
 0x148   :  { %v367_v51 = vpop.f32.mrb[8].mxu0 }
 0x149   :  { %v368_v54 = vadd.f32 %v367_v51, %v1302_v41  ;;  %v369_v55 = vpop.f32.mrb[9].mxu0 }
 0x14a   :  { %v370_v57 = vadd.f32 %v369_v55, %v1306_v42  ;;  %v371_v58 = vpop.f32.mrb[10].mxu0 }
 0x14b   :  { %463 = vst [vmem:[#allocation2 + $0x60] sm:$0xff] %v368_v54  ;;  %v372_v59 = vadd.f32 %v371_v58, %v1302_v41  ;;  %v373_v60 = vpop.f32.mrb[11].mxu0 }
 0x14c   :  { %464 = vst [vmem:[#allocation2 + $0x68] sm:$0xff] %v370_v57  ;;  %v374_v61 = vadd.f32 %v373_v60, %v1306_v42 }
 0x14d   :  { %466 = vst [vmem:[#allocation2 + $0x78] sm:$0xff] %v372_v59 }
 0x14e   :  { %467 = vst [vmem:[#allocation2 + $0x80] sm:$0xff] %v374_v61 }
 0x150   :  { %v377_v62 = vpop.f32.mrb[12].mxu0  ;;  %781 = sbr.rel (%p814_p10) target bundleno = 643 (0x283), region = 62 }
 0x151   :  { %v378_v63 = vadd.f32 %v377_v62, %v1302_v41  ;;  %v379_v36 = vpop.f32.mrb[13].mxu0 }
 0x152   :  { %v380_v48 = vadd.f32 %v379_v36, %v1306_v42  ;;  %v381_v39 = vpop.f32.mrb[14].mxu0 }
 0x153   :  { %469 = vst [vmem:[#allocation2 + $0x90] sm:$0xff] %v378_v63  ;;  %v382_v43 = vadd.f32 %v381_v39, %v1302_v41  ;;  %v383_v44 = vpop.f32.mrb[15].mxu0 }
 0x154   :  { %470 = vst [vmem:[#allocation2 + $0x98] sm:$0xff] %v380_v48  ;;  %v384_v45 = vadd.f32 %v383_v44, %v1306_v42 }
 0x155   :  { %472 = vst [vmem:[#allocation2 + $0xa8] sm:$0xff] %v382_v43 }
 0x156   :  { %473 = vst [vmem:[#allocation2 + $0xb0] sm:$0xff] %v384_v45 }
 0x157 LB: > { %v818_v41 = vcombine.high %v1211_v1, %v1215_v3  ;;  %v817_v42 = vcombine.low %v1211_v1, %v1215_v3  ;;  %v821_v47 = vcombine.high %v1219_v5, %v1223_v7  ;;  %v820_v49 = vcombine.low %v1219_v5, %v1223_v7  ;;  %s815_s27 = sshll.u32 %s1105_s26, 3  ;;  %s1105_s26 = sphi %s1336_s26, %s481_s26   ;;  %v1101_v35 = vphi %v1288_v35, %v1441_v35  }
 0x158   : > { %v819_v50 = vcombine.low %v1213_v2, %v1217_v4  ;;  %v824_v51 = vcombine.high %v1227_v9, %v1231_v11  ;;  %v1119_v52 = vmov 0.0   ;;  %v822_v53 = vcombine.low %v1221_v6, %v1225_v8  ;;  %s486_s29 = sshra.s32 %s815_s27, 3 }
 0x159   : > { %639 = vmatprep.subr.bf16.mxu0 %v818_v41  ;;  %890 = vmatprep.subr.bf16.mxu1 %v1119_v52  ;;  %v1120_v54 = vmov 0   ;;  %v823_v55 = vcombine.low %v1227_v9, %v1231_v11  ;;  %v741_v56 = vstv %s1105_s26  ;;  %v827_v57 = vcombine.high %v1235_v13, %v1239_v15  ;;  %s844_s4 = smul.u32 24, %s486_s29  ;;  %s481_s26 = sadd.s32 1, %s1105_s26  }
 0x15a   : > { %640 = vmatpush1.bf16.msra.mxu0 %v817_v42  ;;  %891 = vmatpush3.bf16.msra.mxu1 %v819_v50  ;;  %vm1121_vm0 = vmmov 0   ;;  %vm742_vm1 = vcmp.gt.s32.totalorder %v1283_v34, %v741_v56  ;;  %v825_v58 = vcombine.low %v1229_v10, %v1233_v12  ;;  %v826_v61 = vcombine.low %v1235_v13, %v1239_v15  ;;  %p480_p11 = scmp.ge.s32.totalorder %s481_s26, %s1431_s0 }
 0x15b   : > { %641 = vmatprep.subr.bf16.mxu0 %v821_v47  ;;  %671 = vmatprep.mubr.bf16.mxu0 %v1120_v54  ;;  %v843_v59 = vsel %vm742_vm1, 1.0, %v1119_v52  ;;  %v830_v62 = vcombine.high %v1243_v17, %v1247_v19  ;;  %v828_v63 = vcombine.low %v1237_v14, %v1241_v16  ;;  %v829_v36 = vcombine.low %v1243_v17, %v1247_v19  ;;  %s490_s28 = scalar_lea.vmem [#allocation2], %s844_s4 }
 0x15c   : > { %892 = vmatprep.subr.bf16.mxu1 %v1119_v52  ;;  %982 = vset.pattern.permute.xlu0 %v1120_v54  ;;  %v751_v60 = vsub.f32 1.0, %v843_v59  ;;  %v833_v48 = vcombine.high %v1251_v21, %v1255_v23  ;;  %v831_v39 = vcombine.low %v1245_v18, %v1249_v20  ;;  %v832_v43 = vcombine.low %v1251_v21, %v1255_v23 }
 0x15d   : > { %906 = vmatprep.mubr.msk.bf16.mxu1 %vm1121_vm0, %v1119_v52  ;;  %747 = vperm.xlu0 %982, %v843_v59   ;;  %v836_v44 = vcombine.high %v1259_v25, %v1263_v27  ;;  %v834_v45 = vcombine.low %v1253_v22, %v1257_v24  ;;  %v835_v46 = vcombine.low %v1259_v25, %v1263_v27  ;;  %v491_v54 = vld [vmem:[%s490_s28] sm:$0xff] }
 0x15e   : > { %642 = vmatpush1.bf16.msra.mxu0 %v820_v49  ;;  %893 = vmatpush3.bf16.msra.mxu1 %v822_v53  ;;  %v839_v41 = vcombine.high %v1267_v29, %v1271_v31  ;;  %v837_v42 = vcombine.low %v1261_v26, %v1265_v28  ;;  %v838_v47 = vcombine.low %v1267_v29, %v1271_v31 }
 0x15f   : > { %643 = vmatprep.subr.bf16.mxu0 %v824_v51  ;;  %894 = vmatprep.subr.bf16.mxu1 %v1119_v52  ;;  %v840_v49 = vcombine.low %v1269_v30, %v1273_v32  ;;  %v494_v50 = vpack.c.bf16 %v1101_v35, %v1101_v35  ;;  %v499_v51 = vrot.slane %v1278_v33, %v148_v38 }
 0x160   : > { %v503_v53 = vrot.slane %v1278_v33, %v152_v40 }
 0x161   : > { %754 = vperm.xlu0 %982, %v751_v60  }
 0x162   : > { %644 = vmatpush1.bf16.msra.mxu0 %v823_v55  ;;  %895 = vmatpush3.bf16.msra.mxu1 %v825_v58 }
 0x163   : > { %645 = vmatprep.subr.bf16.mxu0 %v827_v57  ;;  %896 = vmatprep.subr.bf16.mxu1 %v1119_v52 }
 0x166   : > { %646 = vmatpush1.bf16.msra.mxu0 %v826_v61  ;;  %897 = vmatpush3.bf16.msra.mxu1 %v828_v63 }
 0x167   : > { %647 = vmatprep.subr.bf16.mxu0 %v830_v62  ;;  %898 = vmatprep.subr.bf16.mxu1 %v1119_v52 }
 0x16a   : > { %648 = vmatpush1.bf16.msra.mxu0 %v829_v36  ;;  %899 = vmatpush3.bf16.msra.mxu1 %v831_v39 }
 0x16b   : > { %649 = vmatprep.subr.bf16.mxu0 %v833_v48  ;;  %900 = vmatprep.subr.bf16.mxu1 %v1119_v52 }
 0x16e   : > { %650 = vmatpush1.bf16.msra.mxu0 %v832_v43  ;;  %901 = vmatpush3.bf16.msra.mxu1 %v834_v45 }
 0x16f   : > { %651 = vmatprep.subr.bf16.mxu0 %v836_v44  ;;  %902 = vmatprep.subr.bf16.mxu1 %v1119_v52 }
 0x172   : > { %652 = vmatpush1.bf16.msra.mxu0 %v835_v46  ;;  %903 = vmatpush3.bf16.msra.mxu1 %v837_v42 }
 0x173   : > { %653 = vmatprep.subr.bf16.mxu0 %v839_v41  ;;  %904 = vmatprep.subr.bf16.mxu1 %v1119_v52  ;;  %v492_v52 = vld [vmem:[%s490_s28 + $0x8] sm:$0xff]  ;;  %v507_v41 = vrot.slane %v1278_v33, %v156_v0 }
 0x176   : > { %654 = vmatpush1.bf16.msra.mxu0 %v838_v47  ;;  %905 = vmatpush3.bf16.msra.mxu1 %v840_v49 }
 0x179   : > { %672 = vmatmul.mubr.bf16.vlgmr.msra.gmra.mrb[0].mxu0 %v494_v50  ;;  %907 = vmatmul.mubr.bf16.vlgmr.msra.gmra.mrb[0].mxu1 %v494_v50 }
 0x24c   : > { %v673_v55 = vpop.f32.mrb[0].mxu0  ;;  %v714_v60 = vpop.f32.mrb[0].mxu1 }
 0x24d   : > { %v674_v56 = vadd.f32 %v673_v55, %v499_v51  ;;  %v675_v57 = vpop.f32.mrb[1].mxu0  ;;  %v908_v63 = vpop.f32.mrb[1].mxu1  ;;  %v715_v49 = vadd.f32 %v714_v60, %v507_v41  ;;  %v493_v51 = vld [vmem:[%s490_s28 + $0x10] sm:$0xff] }
 0x24e   : > { %v676_v58 = vadd.f32 %v675_v57, %v503_v53  ;;  %v677_v59 = vpop.f32.mrb[2].mxu0  ;;  %v717_v48 = vpop.f32.mrb[2].mxu1 }
 0x24f   : > { %v720_v61 = vadd.f32 %v674_v56, %v491_v54  ;;  %v678_v62 = vpop.f32.mrb[3].mxu0  ;;  %v909_v43 = vpop.f32.mrb[3].mxu1 }
 0x250   : > { %v727_v36 = vadd.f32 %v676_v58, %v492_v52  ;;  %v748_v56 = vpop.permute.xlu0 %747 }
 0x251   : > { %v841_v39 = vmul.f32 -1.442695, %v720_v61 }
 0x252   : > { %v842_v44 = vmul.f32 -1.442695, %v727_v36 }
 0x253   : > { %983 = vpow2.f32 %v841_v39 }
 0x254   : > { %985 = vpow2.f32 %v842_v44  ;;  %v755_v61 = vpop.permute.xlu0 %754 }
 0x255   : > { %v757_v36 = vmul.f32 %v1101_v35, %v755_v61 }
 0x25d   : > { %v984_v45 = vpop.eup %983 }
 0x25e   : > { %v724_v46 = vadd.f32 1.0, %v984_v45  ;;  %v986_v42 = vpop.eup %985 }
 0x25f   : > { %v731_v47 = vadd.f32 1.0, %v986_v42 }
 0x260   : > { %987 = vrcp.f32 %v724_v46 }
 0x261   : > { %989 = vrcp.f32 %v731_v47 }
 0x26a   : > { %v988_v50 = vpop.eup %987 }
 0x26b   : > { %v734_v53 = vmul.f32 %v988_v50, %v715_v49  ;;  %v990_v55 = vpop.eup %989 }
 0x26c   : > { %v737_v52 = vsub.f32 1.0, %v990_v55  ;;  %v739_v59 = vmul.f32 %v1101_v35, %v990_v55 }
 0x26d   : > { %v735_v54 = vadd.f32 %v734_v53, %v493_v51 }
 0x26f   : > { %991 = vtanh.f32 %v735_v54 }
 0x279   : > { %v992_v57 = vpop.eup %991 }
 0x27a   : > { %v738_v58 = vmul.f32 %v992_v57, %v737_v52 }
 0x27c   : > { %v740_v62 = vadd.f32 %v739_v59, %v738_v58  ;;  %483 = sbr.rel (!%p480_p11) target bundleno = 343 (0x157), region = 68 }
 0x27e   : > { %v750_v63 = vmul.f32 %v748_v56, %v740_v62 }
 0x280   : > { %v758_v48 = vadd.f32 %v757_v36, %v750_v63  }
 0x282   : > { %v1441_v35 = vmov %v758_v48  ;;  %v1442_v46 = vmov (%p480_p11), %v758_v48 }
 0x283 PF:  { %759 = vst [vmem:[#allocation11] sm:$0xff] %v1109_v46  ;;  %s1122_s10 = smov [#allocation11]   ;;  %v1109_v46 = vphi %v1440_v46, %v1442_v46  }
 0x284   :  { %s766_s11 = sshll.u32 %s1122_s10, 4  ;;  %s767_s11 = int_to_ptr.vmem [resolvable:$true] %s766_s11 }
 0x285   :  { %s1059_s12 = scalar_lea.vmem %s767_s11, 128  ;;  %p1064_p13 = scmp.lt.s32.totalorder %s767_s11, %s767_s11 }
 0x286   :  { %p1060_p12 = scmp.ne.s32.totalorder %s767_s11, %s1059_s12  ;;  %p1065_p0 = scmp.lt.s32.totalorder %s1059_s12, %s1059_s12 }
 0x288   :  { %p1066_p1 = por %p1065_p0, %p1064_p13 }
 0x28a   :  { %p1067_p2 = pnand %p1066_p1, %p1060_p12 }
 0x28c   :  { %1070 = shalt.err (!%p1067_p2)
}
 0x28d   :  { %s1071_s0 = scalar_lea.hbm %s1439_s8, 128 }
 0x28e   :  { %p1072_p3 = scmp.ne.s32.totalorder %s1439_s8, %s1071_s0  ;;  %p1075_p4 = scmp.lt.u32.totalorder %s1071_s0, %s1439_s8 }
 0x290   :  { %p1077_p5 = pnand %p1075_p4, %p1072_p3 }
 0x292   :  { %1080 = shalt.err (!%p1077_p5)
}
 0x293   :  { %769 = dma.vmem_to_hbm [thread:$0]  %s767_s11, 128, %s1439_s8, [#allocation7]  }
 0x294   :  { %1097 = dma.done.wait [#allocation7], 128  }
 0x295   :  { %1098 = vsyncadd [#allocation7], 4294967168 }
 0x296   :  { %773 = vsyncpa [#allocation6], 1 }
 0x297   :  { %774 = vsyncpa [#allocation9], 1 }
 0x298   :  { %775 = vsyncpa [#allocation7], 1 }

</bundles_post_ra>
